<compile_context>
chip_gen: v7x
topology: tpu7x:2x2x1
jax: 0.10.0
libtpu: 0.0.40
codegen_flags: <defaults>
</compile_context>

<pallas_src>
import functools

import jax
import jax.numpy as jnp
from jax.experimental import pallas as pl
from jax.experimental.pallas import tpu as pltpu


# ---------------------------------------------------------------------------
# Kernel
# ---------------------------------------------------------------------------
def _expert_kernel(x_ref, w12_ref, b12_ref, w3_ref, b3_ref, gamma_ref, beta_ref,
                   o_ref, acc_ref):
    j = pl.program_id(1)

    @pl.when(j == 0)
    def _init():
        acc_ref[...] = jnp.zeros_like(acc_ref)

    # Fused gate/up projection for this I-tile: (tm, 2*ti), f32 accumulation.
    h12 = jnp.dot(x_ref[...], w12_ref[...],
                  preferred_element_type=jnp.float32) + b12_ref[...]
    h1, h2 = jnp.split(h12, 2, axis=-1)            # lane-aligned split (ti%128==0
    h = (h1 * jax.nn.sigmoid(h1)) * h2             #   or full-extent block)

    # Stream this I-tile straight into the down-projection accumulator.
    # Note: h is cast to the weight dtype (bf16 for bf16 models) before the
    # second matmul; accumulation stays f32.
    acc_ref[...] += jnp.dot(h.astype(w3_ref.dtype), w3_ref[...],
                            preferred_element_type=jnp.float32)

    @pl.when(j == pl.num_programs(1) - 1)
    def _finalize():
        y = acc_ref[...] + b3_ref[...]             # (tm, H), f32
        mean = jnp.mean(y, axis=-1, keepdims=True)
        yc = y - mean
        var = jnp.mean(yc * yc, axis=-1, keepdims=True)   # centered, stable
        y_norm = yc * jax.lax.rsqrt(var + 1e-5)
        o_ref[...] = (y_norm * gamma_ref[...] + beta_ref[...]).astype(o_ref.dtype)


# ---------------------------------------------------------------------------
# Parameter packing (done once, outside the per-call forward)
# ---------------------------------------------------------------------------
def _vmem_capacity_bytes():
    try:
        return int(pltpu.get_tpu_info().vmem_capacity_bytes)
    except Exception:
        return 128 * 1024 * 1024   # v5e/v6e; v7x reports 64 MiB when queryable


def _pick_inter_tile(intermediate_size, vmem_capacity):
    # Lane-aligned candidates only (ti % 128 == 0).  Cap at 512 on
    # small-VMEM generations (v7x: 64 MiB/TC); 1024 allowed on 128 MiB chips.
    max_ti = 512 if vmem_capacity <= 96 * 1024 * 1024 else 1024
    for cand in (1024, 512, 256, 128):
        if cand <= max_ti and intermediate_size % cand == 0:
            return cand
    # Fall back to the full intermediate dim (full-extent blocks are exempt
    # from the (8,128) constraint and the split is trivially correct).
    return intermediate_size


def pack_params(params, *, block_inter=None, param_dtype=None):
    """One-time packing of gate/up weights into a fused [H, 2*I] layout.

    Columns [j*2*ti, (j+1)*2*ti) of the packed weight hold
    [w1 tile j | w2 tile j], so each intermediate tile needs a single
    contiguous weight block and a single MXU pass.

    Returns (packed_params, inter_tile).  `param_dtype=jnp.bfloat16` casts
    the weights for 2x MXU throughput / half the weight-stream bytes.
    """
    w1, b1, w2, b2, w3, b3, gamma, beta = params
    H, I = w1.shape

    ti = _pick_inter_tile(I, _vmem_capacity_bytes()) if block_inter is None \
        else block_inter
    assert I % ti == 0, "intermediate tile must divide intermediate_size"
    nI = I // ti

    w12 = jnp.concatenate(
        [w1.reshape(H, nI, ti), w2.reshape(H, nI, ti)], axis=2).reshape(H, 2 * I)
    b12 = jnp.concatenate(
        [b1.reshape(1, nI, ti), b2.reshape(1, nI, ti)], axis=2).reshape(1, 2 * I)

    if param_dtype is not None:
        w12, b12, w3 = (w12.astype(param_dtype), b12.astype(param_dtype),
                        w3.astype(param_dtype))

    return (w12, b12, w3, b3, gamma, beta), ti


# ---------------------------------------------------------------------------
# Forward pass
# ---------------------------------------------------------------------------
@functools.partial(jax.jit,
                   static_argnames=("inter_tile", "block_tokens", "compute_dtype"))
def expert_forward(x, packed_params, *, inter_tile, block_tokens=512,
                   compute_dtype=None):
    """x: (..., hidden).  packed_params from `pack_params`.  Returns x's shape.

    compute_dtype=jnp.bfloat16 casts activations for the matmuls (weights
    should then be packed with param_dtype=jnp.bfloat16); accumulation and
    the LayerNorm tail stay f32 either way.
    """
    w12, b12, w3, b3, gamma, beta = packed_params
    H = x.shape[-1]
    I = w12.shape[1] // 2
    ti = inter_tile
    assert I % ti == 0
    nI = I // ti

    orig_shape = x.shape
    orig_dtype = x.dtype
    x2d = x.reshape(-1, H)
    if compute_dtype is not None:
        x2d = x2d.astype(compute_dtype)
    T = x2d.shape[0]

    assert block_tokens % 8 == 0, "block_tokens must be a multiple of 8"

    vmem_cap = _vmem_capacity_bytes()
    budget = vmem_cap - 8 * 1024 * 1024            # leave compiler headroom

    x_bytes = jnp.dtype(x2d.dtype).itemsize
    w_bytes = jnp.dtype(w12.dtype).itemsize
    o_bytes = jnp.dtype(orig_dtype).itemsize

    def vmem_estimate(tm):
        est = (2 * tm * H * x_bytes              # x tiles (double buffered)
               + 2 * tm * H * o_bytes            # out tiles (double buffered)
               + 2 * H * (2 * ti) * w_bytes      # fused w1|w2 tiles
               + 2 * ti * H * w_bytes            # w3 tiles
               + 2 * 8 * (2 * ti) * w_bytes      # b12 (sublane-padded)
               + 6 * 8 * H * 4                   # b3 / gamma / beta
               + tm * H * 4)                     # f32 accumulator scratch
        return est + (2 << 20)                   # misc slack

    # Token tile: don't overshoot tiny inputs, stay sublane-aligned, and
    # shrink automatically until the conservative VMEM estimate fits.
    tm = min(block_tokens, ((T + 7) // 8) * 8)
    while tm > 8 and int(1.25 * vmem_estimate(tm)) > budget:
        tm = max(8, ((tm // 2) + 7) // 8 * 8)

    nT = pl.cdiv(T, tm)
    T_pad = nT * tm
    if T_pad != T:
        x2d = jnp.pad(x2d, ((0, T_pad - T), (0, 0)))

    vmem_limit = min(max(int(1.25 * vmem_estimate(tm)), 32 * 1024 * 1024), budget)

    out = pl.pallas_call(
        _expert_kernel,
        out_shape=jax.ShapeDtypeStruct((T_pad, H), orig_dtype),
        grid_spec=pltpu.PrefetchScalarGridSpec(
            num_scalar_prefetch=0,
            grid=(nT, nI),                                    # reduction axis last
            in_specs=[
                pl.BlockSpec((tm, H), lambda i, j: (i, 0)),       # x tile
                pl.BlockSpec((H, 2 * ti), lambda i, j: (0, j)),   # fused w1|w2 tile
                pl.BlockSpec((1, 2 * ti), lambda i, j: (0, j)),   # fused b1|b2 tile
                pl.BlockSpec((ti, H), lambda i, j: (j, 0)),       # w3 tile
                pl.BlockSpec((1, H), lambda i, j: (0, 0)),        # b3
                pl.BlockSpec((1, H), lambda i, j: (0, 0)),        # gamma
                pl.BlockSpec((1, H), lambda i, j: (0, 0)),        # beta
            ],
            out_specs=pl.BlockSpec((tm, H), lambda i, j: (i, 0)),
            scratch_shapes=[pltpu.VMEM((tm, H), jnp.float32)],    # f32 accumulator
        ),
        compiler_params=pltpu.CompilerParams(
            dimension_semantics=("parallel", "arbitrary"),
            vmem_limit_bytes=vmem_limit),
    )(x2d, w12, b12, w3, b3, gamma, beta)

    if T_pad != T:
        out = out[:T]
    return out.reshape(orig_shape)


# ---------------------------------------------------------------------------
# Parameter init + pure-JAX reference
# ---------------------------------------------------------------------------
def init_params(key, hidden_size, intermediate_size, dtype=jnp.float32):
    """Deterministic synthetic parameters (shapes match nn.Linear / LayerNorm)."""
    k1, k2, k3, k4, k5, k6 = jax.random.split(key, 6)
    s_h = 1.0 / jnp.sqrt(hidden_size)
    s_i = 1.0 / jnp.sqrt(intermediate_size)
    w1 = jax.random.uniform(k1, (hidden_size, intermediate_size), dtype, -s_h, s_h)
    b1 = jax.random.uniform(k2, (1, intermediate_size), dtype, -s_h, s_h)
    w2 = jax.random.uniform(k3, (hidden_size, intermediate_size), dtype, -s_h, s_h)
    b2 = jax.random.uniform(k4, (1, intermediate_size), dtype, -s_h, s_h)
    w3 = jax.random.uniform(k5, (intermediate_size, hidden_size), dtype, -s_i, s_i)
    b3 = jax.random.uniform(k6, (1, hidden_size), dtype, -s_i, s_i)
    gamma = jnp.ones((1, hidden_size), dtype)
    beta = jnp.zeros((1, hidden_size), dtype)
    return (w1, b1, w2, b2, w3, b3, gamma, beta)


def expert_reference(x, params):
    """Pure-JAX reference for correctness check."""
    w1, b1, w2, b2, w3, b3, gamma, beta = params
    h = jax.nn.silu(x @ w1 + b1) * (x @ w2 + b2)
    y = h @ w3 + b3
    mean = jnp.mean(y, axis=-1, keepdims=True)
    var = jnp.mean(jnp.square(y - mean), axis=-1, keepdims=True)
    return (y - mean) * jax.lax.rsqrt(var + 1e-5) * gamma + beta


if __name__ == "__main__":
    batch, seq, hidden, intermediate = 2, 8, 32, 64

    key = jax.random.PRNGKey(0)
    kx, kp = jax.random.split(key)
    x = jax.random.normal(kx, (batch, seq, hidden), jnp.float32)
    params = init_params(kp, hidden, intermediate)

    # Pack gate/up weights ONCE (outside the jitted per-call forward).
    packed, inter_tile = pack_params(params)

    out = expert_forward(x, packed, inter_tile=inter_tile)
    out = jax.block_until_ready(out)

    ref = expert_reference(x, params)
    assert out.shape == x.shape
    assert jnp.allclose(out, ref, atol=1e-4, rtol=1e-4), "mismatch vs reference"

    print("KERNEL_OK")
</pallas_src>

<mosaic_0001>
module attributes {stable_mosaic.version = 11 : i64} {
  func.func @_expert_kernel(%arg0: i32, %arg1: i32, %arg2: memref<16x32xf32, #tpu.memory_space<vmem>>, %arg3: memref<32x128xf32, #tpu.memory_space<vmem>>, %arg4: memref<1x128xf32, #tpu.memory_space<vmem>>, %arg5: memref<64x32xf32, #tpu.memory_space<vmem>>, %arg6: memref<1x32xf32, #tpu.memory_space<vmem>>, %arg7: memref<1x32xf32, #tpu.memory_space<vmem>>, %arg8: memref<1x32xf32, #tpu.memory_space<vmem>>, %arg9: memref<16x32xf32, #tpu.memory_space<vmem>>, %arg10: memref<16x32xf32, #tpu.memory_space<vmem>>) attributes {dimension_semantics = [#tpu.dimension_semantics<parallel>, #tpu.dimension_semantics<arbitrary>], iteration_bounds = array<i64: 1, 1>, scalar_prefetch = 0 : i64, scratch_operands = 1 : i64, tpu.core_type = #tpu.core_type<tc>, window_params = [{transform_indices = @transform_0, window_bounds = array<i64: 16, 32>}, {transform_indices = @transform_1, window_bounds = array<i64: 32, 128>}, {transform_indices = @transform_2, window_bounds = array<i64: 1, 128>}, {transform_indices = @transform_3, window_bounds = array<i64: 64, 32>}, {pipeline_mode = #tpu.pipeline_mode<synchronous>, transform_indices = @transform_4, window_bounds = array<i64: 1, 32>}, {pipeline_mode = #tpu.pipeline_mode<synchronous>, transform_indices = @transform_5, window_bounds = array<i64: 1, 32>}, {pipeline_mode = #tpu.pipeline_mode<synchronous>, transform_indices = @transform_6, window_bounds = array<i64: 1, 32>}, {transform_indices = @transform_7, window_bounds = array<i64: 16, 32>}]} {
    %c0_i32 = arith.constant 0 : i32
    %0 = arith.cmpi eq, %arg1, %c0_i32 : i32
    %1 = arith.extui %0 : i1 to i32
    %c0_i32_0 = arith.constant 0 : i32
    %2 = arith.cmpi ne, %1, %c0_i32_0 : i32
    scf.if %2 {
      %cst_16 = arith.constant 0.000000e+00 : f32
      %26 = vector.broadcast %cst_16 : f32 to vector<16x32xf32>
      %c0_17 = arith.constant 0 : index
      %c0_18 = arith.constant 0 : index
      %27 = vector.load %arg10[%c0_17, %c0_18] : memref<16x32xf32, #tpu.memory_space<vmem>>, vector<16x32xf32>
      tpu.vector_store %arg10[%c0_17, %c0_18], %26 {strides = array<i32>} : memref<16x32xf32, #tpu.memory_space<vmem>>, vector<16x32xf32>,
    } else {
    }
    %c0 = arith.constant 0 : index
    %c0_1 = arith.constant 0 : index
    %3 = vector.load %arg2[%c0, %c0_1] : memref<16x32xf32, #tpu.memory_space<vmem>>, vector<16x32xf32>
    %c0_2 = arith.constant 0 : index
    %c0_3 = arith.constant 0 : index
    %4 = vector.load %arg3[%c0_2, %c0_3] : memref<32x128xf32, #tpu.memory_space<vmem>>, vector<32x128xf32>
    %cst = arith.constant dense<0.000000e+00> : vector<16x128xf32>
    %5 = tpu.matmul %3, %4, %cst {dimension_numbers = #tpu.dot_dimension_numbers<[1], [0], [0], [1], [0, 0, 1, 1], [], []>} : vector<16x32xf32>, vector<32x128xf32>, vector<16x128xf32> -> vector<16x128xf32>
    %c0_4 = arith.constant 0 : index
    %c0_5 = arith.constant 0 : index
    %6 = vector.load %arg4[%c0_4, %c0_5] : memref<1x128xf32, #tpu.memory_space<vmem>>, vector<1x128xf32>
    %7 = vector.broadcast %6 : vector<1x128xf32> to vector<16x128xf32>
    %8 = arith.addf %5, %7 : vector<16x128xf32>
    %9 = vector.extract_strided_slice %8 {offsets = [0, 0], sizes = [16, 64], strides = [1, 1]} : vector<16x128xf32> to vector<16x64xf32>
    %10 = vector.extract_strided_slice %8 {offsets = [0, 64], sizes = [16, 64], strides = [1, 1]} : vector<16x128xf32> to vector<16x64xf32>
    %11 = arith.negf %9 : vector<16x64xf32>
    %12 = math.exp %11 : vector<16x64xf32>
    %cst_6 = arith.constant 1.000000e+00 : f32
    %13 = vector.broadcast %cst_6 : f32 to vector<16x64xf32>
    %14 = arith.addf %13, %12 : vector<16x64xf32>
    %15 = arith.divf %13, %14 : vector<16x64xf32>
    %16 = arith.mulf %9, %15 : vector<16x64xf32>
    %17 = arith.mulf %16, %10 : vector<16x64xf32>
    %c0_7 = arith.constant 0 : index
    %c0_8 = arith.constant 0 : index
    %18 = vector.load %arg10[%c0_7, %c0_8] : memref<16x32xf32, #tpu.memory_space<vmem>>, vector<16x32xf32>
    %c0_9 = arith.constant 0 : index
    %c0_10 = arith.constant 0 : index
    %19 = vector.load %arg5[%c0_9, %c0_10] : memref<64x32xf32, #tpu.memory_space<vmem>>, vector<64x32xf32>
    %cst_11 = arith.constant dense<0.000000e+00> : vector<16x32xf32>
    %20 = tpu.matmul %17, %19, %cst_11 {dimension_numbers = #tpu.dot_dimension_numbers<[1], [0], [0], [1], [0, 0, 1, 1], [], []>} : vector<16x64xf32>, vector<64x32xf32>, vector<16x32xf32> -> vector<16x32xf32>
    %21 = arith.addf %18, %20 : vector<16x32xf32>
    %c0_12 = arith.constant 0 : index
    %c0_13 = arith.constant 0 : index
    %22 = vector.load %arg10[%c0_12, %c0_13] : memref<16x32xf32, #tpu.memory_space<vmem>>, vector<16x32xf32>
    tpu.vector_store %arg10[%c0_12, %c0_13], %21 {strides = array<i32>} : memref<16x32xf32, #tpu.memory_space<vmem>>, vector<16x32xf32>,
    %c0_i32_14 = arith.constant 0 : i32
    %23 = arith.cmpi eq, %arg1, %c0_i32_14 : i32
    %24 = arith.extui %23 : i1 to i32
    %c0_i32_15 = arith.constant 0 : i32
    %25 = arith.cmpi ne, %24, %c0_i32_15 : i32
    scf.if %25 {
      %c0_16 = arith.constant 0 : index
      %c0_17 = arith.constant 0 : index
      %26 = vector.load %arg10[%c0_16, %c0_17] : memref<16x32xf32, #tpu.memory_space<vmem>>, vector<16x32xf32>
      %c0_18 = arith.constant 0 : index
      %c0_19 = arith.constant 0 : index
      %27 = vector.load %arg6[%c0_18, %c0_19] : memref<1x32xf32, #tpu.memory_space<vmem>>, vector<1x32xf32>
      %28 = vector.broadcast %27 : vector<1x32xf32> to vector<16x32xf32>
      %29 = arith.addf %26, %28 : vector<16x32xf32>
      %cst_20 = arith.constant dense<0.000000e+00> : vector<16xf32>
      %30 = vector.multi_reduction <add>, %29, %cst_20 [1] : vector<16x32xf32> to vector<16xf32>
      %31 = vector.shape_cast %30 : vector<16xf32> to vector<16x1xf32>
      %cst_21 = arith.constant 3.200000e+01 : f32
      %32 = vector.broadcast %cst_21 : f32 to vector<16x1xf32>
      %33 = arith.divf %31, %32 : vector<16x1xf32>
      %34 = vector.broadcast %33 : vector<16x1xf32> to vector<16x32xf32>
      %35 = arith.subf %29, %34 : vector<16x32xf32>
      %36 = arith.mulf %35, %35 : vector<16x32xf32>
      %cst_22 = arith.constant dense<0.000000e+00> : vector<16xf32>
      %37 = vector.multi_reduction <add>, %36, %cst_22 [1] : vector<16x32xf32> to vector<16xf32>
      %38 = vector.shape_cast %37 : vector<16xf32> to vector<16x1xf32>
      %cst_23 = arith.constant 3.200000e+01 : f32
      %39 = vector.broadcast %cst_23 : f32 to vector<16x1xf32>
      %40 = arith.divf %38, %39 : vector<16x1xf32>
      %cst_24 = arith.constant 9.99999974E-6 : f32
      %41 = vector.broadcast %cst_24 : f32 to vector<16x1xf32>
      %42 = arith.addf %40, %41 : vector<16x1xf32>
      %43 = math.rsqrt %42 : vector<16x1xf32>
      %44 = vector.broadcast %43 : vector<16x1xf32> to vector<16x32xf32>
      %45 = arith.mulf %35, %44 : vector<16x32xf32>
      %c0_25 = arith.constant 0 : index
      %c0_26 = arith.constant 0 : index
      %46 = vector.load %arg7[%c0_25, %c0_26] : memref<1x32xf32, #tpu.memory_space<vmem>>, vector<1x32xf32>
      %47 = vector.broadcast %46 : vector<1x32xf32> to vector<16x32xf32>
      %48 = arith.mulf %45, %47 : vector<16x32xf32>
      %c0_27 = arith.constant 0 : index
      %c0_28 = arith.constant 0 : index
      %49 = vector.load %arg8[%c0_27, %c0_28] : memref<1x32xf32, #tpu.memory_space<vmem>>, vector<1x32xf32>
      %50 = vector.broadcast %49 : vector<1x32xf32> to vector<16x32xf32>
      %51 = arith.addf %48, %50 : vector<16x32xf32>
      %c0_29 = arith.constant 0 : index
      %c0_30 = arith.constant 0 : index
      %52 = vector.load %arg9[%c0_29, %c0_30] : memref<16x32xf32, #tpu.memory_space<vmem>>, vector<16x32xf32>
      tpu.vector_store %arg9[%c0_29, %c0_30], %51 {strides = array<i32>} : memref<16x32xf32, #tpu.memory_space<vmem>>, vector<16x32xf32>,
    } else {
    }
    return
  }
  func.func @transform_0(%arg0: i32, %arg1: i32) -> (i32, i32) {
    %c0_i32 = arith.constant 0 : i32
    %c0_i32_0 = arith.constant 0 : i32
    return %arg0, %c0_i32 : i32, i32
  }
  func.func @transform_1(%arg0: i32, %arg1: i32) -> (i32, i32) {
    %c0_i32 = arith.constant 0 : i32
    %c0_i32_0 = arith.constant 0 : i32
    return %c0_i32, %arg1 : i32, i32
  }
  func.func @transform_2(%arg0: i32, %arg1: i32) -> (i32, i32) {
    %c0_i32 = arith.constant 0 : i32
    %c0_i32_0 = arith.constant 0 : i32
    return %c0_i32, %arg1 : i32, i32
  }
  func.func @transform_3(%arg0: i32, %arg1: i32) -> (i32, i32) {
    %c0_i32 = arith.constant 0 : i32
    %c0_i32_0 = arith.constant 0 : i32
    return %arg1, %c0_i32 : i32, i32
  }
  func.func @transform_4(%arg0: i32, %arg1: i32) -> (i32, i32) {
    %c0_i32 = arith.constant 0 : i32
    %c0_i32_0 = arith.constant 0 : i32
    %c0_i32_1 = arith.constant 0 : i32
    return %c0_i32, %c0_i32_0 : i32, i32
  }
  func.func @transform_5(%arg0: i32, %arg1: i32) -> (i32, i32) {
    %c0_i32 = arith.constant 0 : i32
    %c0_i32_0 = arith.constant 0 : i32
    %c0_i32_1 = arith.constant 0 : i32
    return %c0_i32, %c0_i32_0 : i32, i32
  }
  func.func @transform_6(%arg0: i32, %arg1: i32) -> (i32, i32) {
    %c0_i32 = arith.constant 0 : i32
    %c0_i32_0 = arith.constant 0 : i32
    %c0_i32_1 = arith.constant 0 : i32
    return %c0_i32, %c0_i32_0 : i32, i32
  }
  func.func @transform_7(%arg0: i32, %arg1: i32) -> (i32, i32) {
    %c0_i32 = arith.constant 0 : i32
    %c0_i32_0 = arith.constant 0 : i32
    return %arg0, %c0_i32 : i32, i32
  }
}

</mosaic_0001>

<bundles_post_ra>
// kernel: expert_forward.1
= control target key start
LH: loop header
LB: loop body
LE: loop exit
PB: predicated region body
PF: predicated region fallthrough
CT: control target
= control target key end

     0   :  { %vm31_vm0 = vcmask 261120   ;;  %s570_s0 = inlined_call_operand.vmem [shape: f32[16,32], index: 0, kind: input, shape index: {}]   ;;  %s571_s1 = inlined_call_operand.vmem [shape: f32[32,128], index: 1, kind: input, shape index: {}]   ;;  %s572_s2 = inlined_call_operand.vmem [shape: f32[1,128], index: 2, kind: input, shape index: {}]   ;;  %s573_s3 = inlined_call_operand.vmem [shape: f32[64,32], index: 3, kind: input, shape index: {}]   ;;  %s574_s4 = inlined_call_operand.vmem [shape: f32[1,32], index: 4, kind: input, shape index: {}]   ;;  %s575_s5 = inlined_call_operand.vmem [shape: f32[1,32], index: 5, kind: input, shape index: {}]   ;;  %s576_s6 = inlined_call_operand.vmem [shape: f32[1,32], index: 6, kind: input, shape index: {}]   ;;  %s577_s7 = inlined_call_operand.hbm [shape: f32[16,32], index: 7, kind: output, shape index: {}]  }
   0x1   :  { %v36_v0 = vld [vmem:[%s571_s1] sm:$0xff]  ;;  %v37_v1 = vld [vmem:[%s571_s1 + $0x8] sm:$0xff]  ;;  %v38_v2 = vld [vmem:[%s571_s1 + $0x10] sm:$0xff] }
   0x2   :  { %v382_v3 = vpack.c.bf16 %v37_v1, %v36_v0  ;;  %v39_v4 = vld [vmem:[%s571_s1 + $0x18] sm:$0xff]  ;;  %v34_v5 = vld [vmem:[%s570_s0] sm:$0xff] }
   0x3   :  { %v386_v6 = vpack.c.bf16 %v39_v4, %v38_v2  ;;  %360 = vmatprep.mubr.msk.f32.mxu0 %vm31_vm0, %v34_v5 }
   0x4   :  { %12 = vsyncpa [#allocation4], 0  ;;  %383 = vmatprep.subr.bf16.mxu0 %v382_v3  ;;  %v35_v7 = vld [vmem:[%s570_s0 + $0x8] sm:$0xff]  ;;  %v155_v8 = vld [vmem:[%s573_s3] sm:$0xff]  ;;  %v447_v20 = vmov 0.0   ;;  %s448_s29 = smov 64  }
   0x5   :  { %385 = vmatpush3.bf16.msra.mxu0 %v382_v3  ;;  %v156_v9 = vld [vmem:[%s573_s3 + $0x8] sm:$0xff]  ;;  %v157_v10 = vld [vmem:[%s573_s3 + $0x10] sm:$0xff]  ;;  %v158_v12 = vld [vmem:[%s573_s3 + $0x18] sm:$0xff]  ;;  %33 = vst.msk [vmem:[#allocation2 + $0x8] sm:$0xff] %vm31_vm0, %v447_v20  ;;  %vm163_vm1 = vcmask 523264   ;;  %s449_s10 = smov [#allocation3]  }
   0x6   :  { %387 = vmatprep.subr.bf16.mxu0 %v386_v6  ;;  %v390_v11 = vpack.c.bf16 %v156_v9, %v155_v8  ;;  %v394_v13 = vpack.c.bf16 %v158_v12, %v157_v10  ;;  %v159_v14 = vld [vmem:[%s573_s3 + $0x20] sm:$0xff]  ;;  %v160_v15 = vld [vmem:[%s573_s3 + $0x28] sm:$0xff]  ;;  %v161_v17 = vld [vmem:[%s573_s3 + $0x30] sm:$0xff]  ;;  %32 = vst.msk [vmem:[#allocation2] sm:$0xff] %vm31_vm0, %v447_v20  ;;  %s315_s11 = sshll.u32 %s449_s10, 4  ;;  %s316_s11 = int_to_ptr.vmem [resolvable:$true] %s315_s11 }
   0x7   :  { %v398_v16 = vpack.c.bf16 %v160_v15, %v159_v14  ;;  %v162_v18 = vld [vmem:[%s573_s3 + $0x38] sm:$0xff]  ;;  %v326_v21 = vld [vmem:[%s572_s2] ss:$0 sm:$0xff]  ;;  %s423_s12 = scalar_lea.vmem %s316_s11, 256  ;;  %p428_p1 = scmp.lt.s32.totalorder %s316_s11, %s316_s11 }
   0x8   :  { %391 = vmatprep.subr.bf16.mxu1 %v390_v11  ;;  %v402_v19 = vpack.c.bf16 %v162_v18, %v161_v17  ;;  %v333_v46 = vld [vmem:[%s574_s4] ss:$0 sm:$0xff]  ;;  %p424_p0 = scmp.ne.s32.totalorder %s316_s11, %s423_s12  ;;  %p429_p2 = scmp.lt.s32.totalorder %s423_s12, %s423_s12 }
   0x9   :  { %389 = vmatpush3.bf16.msra.mxu0 %v386_v6  ;;  %393 = vmatpush3.bf16.msra.mxu1 %v390_v11  ;;  %v334_v6 = vld [vmem:[%s575_s5] ss:$0 sm:$0xff] }
   0xa   :  { %395 = vmatprep.subr.bf16.mxu1 %v394_v13  ;;  %v335_v8 = vld [vmem:[%s576_s6] ss:$0 sm:$0xff]  ;;  %p430_p3 = por %p429_p2, %p428_p1 }
   0xc   :  { %361 = vmatmul.mubr.msk.f32.vlgmr.msra.gmra.mrb[0].mxu0 %vm31_vm0, %v35_v7  ;;  %v154_v40 = vld [vmem:[#allocation2 + $0x8] sm:$0xff]  ;;  %p431_p4 = pnand %p430_p3, %p424_p0 }
   0xd   :  { %397 = vmatpush3.bf16.msra.mxu1 %v394_v13  ;;  %v153_v41 = vld [vmem:[#allocation2] sm:$0xff] }
   0xe   :  { %399 = vmatprep.subr.bf16.mxu1 %v398_v16 }
  0x11   :  { %401 = vmatpush3.bf16.msra.mxu1 %v398_v16 }
  0x12   :  { %403 = vmatprep.subr.bf16.mxu1 %v402_v19 }
  0x15   :  { %405 = vmatpush3.bf16.msra.mxu1 %v402_v19 }
  0xdf   :  { %v362_v22 = vpop.f32.mrb[0].mxu0 }
  0xe0   :  { %v120_v23 = vpop.f32.mrb[1].mxu0  ;;  %v126_v25 = vadd.f32 %v362_v22, %v326_v21 }
  0xe1   :  { %v121_v24 = vadd.f32 %v326_v21, %v120_v23 }
  0xe2   :  { %v330_v27 = vmul.f32 -1.442695, %v126_v25 }
  0xe3   :  { %145 = vrot.lane.b32.xlu0 %v121_v24, %s448_s29  ;;  %v329_v26 = vmul.f32 -1.442695, %v121_v24 }
  0xe5   :  { %411 = vpow2.f32 %v329_v26 }
  0xe6   :  { %413 = vpow2.f32 %v330_v27 }
  0xe7   :  { %147 = vrot.lane.b32.xlu0 %v126_v25, %s448_s29 }
  0xef   :  { %v412_v28 = vpop.eup %411 }
  0xf0   :  { %v135_v29 = vadd.f32 1.0, %v412_v28  ;;  %v414_v30 = vpop.eup %413 }
  0xf1   :  { %v136_v31 = vadd.f32 1.0, %v414_v30 }
  0xf2   :  { %415 = vrcp.f32 %v135_v29 }
  0xf3   :  { %417 = vrcp.f32 %v136_v31 }
  0xfc   :  { %v416_v32 = vpop.eup %415 }
  0xfd   :  { %v141_v33 = vmul.f32 %v416_v32, %v121_v24  ;;  %v418_v34 = vpop.eup %417 }
  0xfe   :  { %v142_v37 = vmul.f32 %v418_v34, %v126_v25 }
 0x155   :  { %v146_v35 = vpop.permute.xlu0 %145 }
 0x156   :  { %v151_v36 = vmul.f32 %v146_v35, %v141_v33 }
 0x158   :  { %379 = vmatprep.mubr.msk.f32.mxu1 %vm163_vm1, %v151_v36 }
 0x159   :  { %v148_v38 = vpop.permute.xlu0 %147 }
 0x15a   :  { %v152_v39 = vmul.f32 %v148_v38, %v142_v37 }
 0x15c   :  { %380 = vmatmul.mubr.msk.f32.vlgmr.msra.gmra.mrb[0].mxu1 %vm163_vm1, %v152_v39 }
 0x22f   :  { %v381_v42 = vpop.f32.mrb[0].mxu1 }
 0x230   :  { %v246_v43 = vadd.f32 %v381_v42, %v154_v40  ;;  %v236_v44 = vpop.f32.mrb[1].mxu1 }
 0x231   :  { %v245_v45 = vadd.f32 %v236_v44, %v153_v41 }
 0x232   :  { %248 = vst.msk [vmem:[#allocation2 + $0x8] sm:$0xff] %vm31_vm0, %v246_v43 }
 0x233   :  { %247 = vst.msk [vmem:[#allocation2] sm:$0xff] %vm31_vm0, %v245_v45 }
 0x239   :  { %v253_v48 = vld [vmem:[#allocation2 + $0x8] sm:$0xff] }
 0x23a   :  { %v252_v47 = vld [vmem:[#allocation2] sm:$0xff]  ;;  %v262_v51 = vadd.f32 %v333_v46, %v253_v48 }
 0x23b   :  { %v261_v49 = vadd.f32 %v333_v46, %v252_v47 }
 0x23c   :  { %v266_v52 = vsel %vm31_vm0, %v262_v51, 0.0 }
 0x23d   :  { %v263_v50 = vsel %vm31_vm0, %v261_v49, 0.0 }
 0x23e   :  { %264 = vadd.xlane.f32.xlu1 %v263_v50 }
 0x242   :  { %267 = vadd.xlane.f32.xlu1 %v266_v52 }
 0x2cb   :  { %v265_v53 = vpop.xlane.xlu1 %264 }
 0x2cc   :  { %v270_v54 = vmul.f32 0.03125, %v265_v53 }
 0x2ce   :  { %v272_v55 = vsub.f32 %v261_v49, %v270_v54 }
 0x2cf   :  { %v268_v56 = vpop.xlane.xlu1 %267 }
 0x2d0   :  { %v271_v57 = vmul.f32 0.03125, %v268_v56  ;;  %v274_v58 = vmul.f32 %v272_v55, %v272_v55 }
 0x2d2   :  { %v273_v59 = vsub.f32 %v262_v51, %v271_v57  ;;  %v276_v60 = vsel %vm31_vm0, %v274_v58, 0.0 }
 0x2d3   :  { %277 = vadd.xlane.f32.xlu0 %v276_v60 }
 0x2d4   :  { %v275_v61 = vmul.f32 %v273_v59, %v273_v59 }
 0x2d6   :  { %v279_v62 = vsel %vm31_vm0, %v275_v61, 0.0 }
 0x2d7   :  { %280 = vadd.xlane.f32.xlu1 %v279_v62 }
 0x360   :  { %v278_v63 = vpop.xlane.xlu0 %277 }
 0x361   :  { %v282_v0 = vmul.f32 0.03125, %v278_v63 }
 0x363   :  { %v284_v1 = vadd.f32 1e-05, %v282_v0 }
 0x364   :  { %v281_v2 = vpop.xlane.xlu1 %280 }
 0x365   :  { %419 = vrsqrt.f32 %v284_v1  ;;  %v283_v3 = vmul.f32 0.03125, %v281_v2 }
 0x367   :  { %v285_v4 = vadd.f32 1e-05, %v283_v3 }
 0x369   :  { %421 = vrsqrt.f32 %v285_v4 }
 0x36f   :  { %v420_v5 = vpop.eup %419 }
 0x370   :  { %v288_v7 = vmul.f32 %v420_v5, %v272_v55 }
 0x372   :  { %v297_v9 = vmul.f32 %v334_v6, %v288_v7 }
 0x373   :  { %v422_v10 = vpop.eup %421 }
 0x374   :  { %v289_v11 = vmul.f32 %v422_v10, %v273_v59  ;;  %v306_v12 = vadd.f32 %v335_v8, %v297_v9 }
 0x376   :  { %v298_v13 = vmul.f32 %v334_v6, %v289_v11  ;;  %308 = vst.msk [vmem:[#allocation3] sm:$0xff] %vm31_vm0, %v306_v12 }
 0x378   :  { %v307_v14 = vadd.f32 %v335_v8, %v298_v13 }
 0x37a   :  { %309 = vst.msk [vmem:[#allocation3 + $0x8] sm:$0xff] %vm31_vm0, %v307_v14 }
 0x37b   :  { %434 = shalt.err (!%p431_p4)
}
 0x37c   :  { %s435_s13 = scalar_lea.hbm %s577_s7, 256 }
 0x37d   :  { %p436_p5 = scmp.ne.s32.totalorder %s577_s7, %s435_s13  ;;  %p439_p6 = scmp.lt.u32.totalorder %s435_s13, %s577_s7 }
 0x37f   :  { %p441_p7 = pnand %p439_p6, %p436_p5 }
 0x381   :  { %444 = shalt.err (!%p441_p7)
}
 0x382   :  { %s450_s17 = smov 128   ;;  %s451_s18 = smov 8  }
 0x383   :  { %321 = dma.vmem_to_hbm [thread:$0]  %s316_s11, 256, %s577_s7, [#allocation4], %s450_s17, %s450_s17, %s451_s18  }
 0x384   :  { %445 = dma.done.wait [#allocation4], 256  }
 0x385   :  { %446 = vsyncadd [#allocation4], 4294967040 }
 0x386   :  { %325 = vsyncpa [#allocation4], 1 }

</bundles_post_ra>
